<compile_context>
chip_gen: v6e
topology: v6e:2x2x1
jax: 0.10.0
libtpu: 0.0.40
codegen_flags: <defaults>
</compile_context>

<pallas_src>
import functools

import jax
import jax.numpy as jnp
from jax.experimental import pallas as pl
from jax.experimental.pallas import tpu as pltpu


def _round_up(x, m):
    return ((x + m - 1) // m) * m


def _pad_axis(x, axis, target):
    cur = x.shape[axis]
    if cur == target:
        return x
    pads = [(0, 0)] * x.ndim
    pads[axis] = (0, target - cur)
    return jnp.pad(x, pads)


def _unfold(x, ksize, stride, padding):
    """torch.nn.Unfold equivalent: (B,C,H,W) -> (B, C*k*k, L), (C,kh,kw) fastest-last order."""
    B, C, H, W = x.shape
    xp = jnp.pad(x, ((0, 0), (0, 0), (padding, padding), (padding, padding)))
    Ho = (H + 2 * padding - ksize) // stride + 1
    Wo = (W + 2 * padding - ksize) // stride + 1
    cols = []
    for kh in range(ksize):
        for kw in range(ksize):
            cols.append(xp[:, :, kh:kh + stride * Ho:stride, kw:kw + stride * Wo:stride])
    patches = jnp.stack(cols, axis=2)               # (B, C, k*k, Ho, Wo)
    return patches.reshape(B, C * ksize * ksize, Ho * Wo)


def _ca_kernel(xu_ref, wnt_ref, rw_ref, o_ref, *, mxu_dtype):
    # xu_ref : (1, TP, K1p)  im2col'd downsampled foreground pixels (rows), zero-padded
    # wnt_ref: (1, K1p, L)   L2-normalized bg patches with (mask * scale) pre-folded
    # rw_ref : (1, L, K2p)   raw bg patches with the post-softmax mask pre-folded
    xu = xu_ref[0].astype(mxu_dtype)
    wnt = wnt_ref[0].astype(mxu_dtype)

    # scores in (P, L) layout: softmax reduction is along the last (lane) axis and
    # the second matmul contracts L as a standard contraction (no XLU transpose).
    s = jnp.dot(xu, wnt, preferred_element_type=jnp.float32)          # (TP, L) f32
    m = jnp.max(s, axis=-1, keepdims=True)
    e = jnp.exp(s - m)                                                # f32 softmax numerators
    denom = jnp.sum(e, axis=-1, keepdims=True)                        # sums over ALL L rows (masked rows score 0)

    out = jnp.dot(e.astype(mxu_dtype), rw_ref[0].astype(mxu_dtype),
                  preferred_element_type=jnp.float32)                 # (TP, K2p)
    # normalize the small (TP, K2p) result instead of the (TP, L) probabilities
    o_ref[0] = (out * pl.reciprocal(denom, approx=True)).astype(o_ref.dtype)


def _choose_tp(P, L, K1, K2, budget_bytes=36 * 1024 * 1024):
    """Pick a P-tile size so double-buffered blocks + (TP, L) intermediates fit VMEM."""
    resident = 8 * L * (K1 + K2)                                  # wnT + rw blocks (f32, 2 buffers)
    per_row = 8 * (K1 + K2) + 16 * L + 2 * (K1 + K2 + L)          # xu/out blocks + s/e + bf16 copies
    avail = max(budget_bytes - resident, 8 * per_row)
    tp = max(8, min(512, int(avail // per_row)))
    tp = min(tp, _round_up(P, 8))
    # rebalance so the last tile is not mostly padding
    n = -(-P // tp)
    tp = _round_up(-(-P // n), 8)
    return tp


def _attention_patches_pallas(xuT, wnT, rw, *, mxu_dtype=jnp.bfloat16,
                              vmem_limit_bytes=48 * 1024 * 1024):
    B, P, K1 = xuT.shape
    L = wnT.shape[2]
    K2 = rw.shape[2]

    # lane-dense alignment of the contraction dim and the output's last dim
    K1p = _round_up(K1, 128)
    K2p = _round_up(K2, 128)
    tp = _choose_tp(P, L, K1p, K2p)
    Pp = _round_up(P, tp)

    xuTp = _pad_axis(_pad_axis(xuT, 2, K1p), 1, Pp)
    wnTp = _pad_axis(wnT, 1, K1p)
    rwp = _pad_axis(rw, 2, K2p)

    out = pl.pallas_call(
        functools.partial(_ca_kernel, mxu_dtype=mxu_dtype),
        out_shape=jax.ShapeDtypeStruct((B, Pp, K2p), jnp.float32),
        grid=(B, Pp // tp),
        in_specs=[
            pl.BlockSpec((1, tp, K1p), lambda bi, pi: (bi, pi, 0)),
            pl.BlockSpec((1, K1p, L), lambda bi, pi: (bi, 0, 0)),   # resident across P tiles
            pl.BlockSpec((1, L, K2p), lambda bi, pi: (bi, 0, 0)),   # resident across P tiles
        ],
        out_specs=pl.BlockSpec((1, tp, K2p), lambda bi, pi: (bi, pi, 0)),
        compiler_params=pltpu.CompilerParams(
            dimension_semantics=("parallel", "parallel"),   # keeps both v7x TCs busy even at B=1
            vmem_limit_bytes=vmem_limit_bytes),
    )(xuTp, wnTp, rwp)
    return out[:, :P, :K2]


def _attention_patches_ref(xuT, wnT, rw, *, mxu_dtype=jnp.bfloat16):
    """Pure-JAX reference of the same math (same MXU-boundary casts)."""
    s = jnp.einsum('bpk,bkl->bpl', xuT.astype(mxu_dtype), wnT.astype(mxu_dtype),
                   preferred_element_type=jnp.float32)
    e = jnp.exp(s - jnp.max(s, axis=-1, keepdims=True))
    denom = jnp.sum(e, axis=-1, keepdims=True)
    out = jnp.einsum('bpl,blk->bpk', e.astype(mxu_dtype), rw.astype(mxu_dtype),
                     preferred_element_type=jnp.float32)
    return out / denom


def contextual_attention(f, b, mask=None, *, ksize=3, stride=1, rate=2,
                         fuse_k=3, softmax_scale=10.0, n_down=2,
                         mxu_dtype=jnp.bfloat16, use_pallas=True):
    # register_buffer('fuse_weight', eye(fuse_k)) — deterministic, unused with fuse=False
    _fuse_weight = jnp.eye(fuse_k, dtype=jnp.float32).reshape(1, 1, fuse_k, fuse_k)
    # TODO(synk): fuse=True path (two identity-kernel fuse convs) and return_flow path
    # (argmax offsets + numpy flow_to_image color-wheel) are not implemented.

    B, C, H, W = f.shape
    Bb, Cb, Hb, Wb = b.shape
    kernel = 2 * rate

    # raw (full-res) background patches: filters for the final deconv
    raw_pad = (kernel - 1) // 2
    raw_w = _unfold(b, kernel, rate * stride, raw_pad)          # (B, C*kr*kr, Lr)
    raw_w = jnp.transpose(raw_w, (0, 2, 1))                     # (B, Lr, K2)
    Lr = raw_w.shape[1]

    # nearest downsample by 1/rate (exact for integer rate dividing H, W)
    fd = f[:, :, ::rate, ::rate]
    bd = b[:, :, ::rate, ::rate]
    Hf, Wf = fd.shape[2], fd.shape[3]
    Hbd, Wbd = bd.shape[2], bd.shape[3]
    P = Hf * Wf

    pad = (ksize - 1) // 2
    w = _unfold(bd, ksize, stride, pad)                         # (B, C*ks*ks, L)
    w = jnp.transpose(w, (0, 2, 1))                             # (B, L, K1)
    L = w.shape[1]
    assert L == Lr, "inconsistent rate/shape (same constraint as the torch module)"

    xuT = jnp.transpose(_unfold(fd, ksize, stride, pad), (0, 2, 1))   # (B, P, K1)

    # mask -> per-patch validity mm (computed from batch 0, shared, as in torch)
    if mask is None:
        mask = jnp.zeros((Bb, 1, Hbd, Wbd), jnp.float32)
    else:
        ds = (2 ** n_down) * rate
        mask = mask[:, :, ::ds, ::ds]
    m0 = _unfold(mask, ksize, stride, pad)[0]                   # (ks*ks*1, L)
    mm = (jnp.mean(m0, axis=0) == 0.0).astype(jnp.float32)      # (L,)

    # Hoist everything that is O(L*K) off the O(L*P) path:
    #   * L2 normalization via rsqrt (identical to sqrt().clamp_min(1e-4) then divide)
    #   * pre-softmax mask and softmax scale -> folded into the score filters
    #   * post-softmax mask                  -> folded into the raw deconv patches
    sumsq = jnp.sum(w * w, axis=2, keepdims=True)
    wn = w * jax.lax.rsqrt(jnp.maximum(sumsq, 1e-8))
    wnT = jnp.transpose(wn * (mm[None, :, None] * softmax_scale), (0, 2, 1))   # (B, K1, L)
    rw_m = raw_w * mm[None, :, None]                                           # (B, L, K2)

    if use_pallas:
        out_patches = _attention_patches_pallas(xuT, wnT, rw_m, mxu_dtype=mxu_dtype)
    else:
        out_patches = _attention_patches_ref(xuT, wnT, rw_m, mxu_dtype=mxu_dtype)

    # overlap-add ("fold") half of conv_transpose2d(yi, raw_wi, stride=rate, padding=1) / 4
    # (the matmul half already happened in the kernel).  Since kernel = 2*rate, write
    # kh = dh*rate + rh  ->  the strided scatter becomes q^2 = 4 shifted dense adds
    # plus one interleaving reshape (no dynamic-update-slice scatters).
    q = kernel // rate                                          # == 2
    op = out_patches.reshape(B, Hf, Wf, C, kernel, kernel)
    op = jnp.transpose(op, (0, 3, 1, 2, 4, 5))                  # (B,C,Hf,Wf,kr,kr)
    op6 = op.reshape(B, C, Hf, Wf, q, rate, q, rate)
    Ht, Wt = Hf + q - 1, Wf + q - 1
    acc = jnp.zeros((B, C, Ht, Wt, rate, rate), jnp.float32)
    for dh in range(q):
        for dw in range(q):
            piece = op6[:, :, :, :, dh, :, dw, :]               # (B,C,Hf,Wf,rate,rate)
            piece = jnp.pad(piece, ((0, 0), (0, 0), (dh, q - 1 - dh),
                                    (dw, q - 1 - dw), (0, 0), (0, 0)))
            acc = acc + piece
    full = jnp.transpose(acc, (0, 1, 2, 4, 3, 5)).reshape(B, C, Ht * rate, Wt * rate)
    tpad = 1                                                    # conv_transpose padding in the module
    y = full[:, :, tpad:Ht * rate - tpad, tpad:Wt * rate - tpad] / 4.0
    return y.reshape(B, C, H, W), None


if __name__ == "__main__":
    key = jax.random.PRNGKey(0)
    kf, kb = jax.random.split(key)
    B, C, H, W = 2, 4, 16, 16
    f = jax.random.normal(kf, (B, C, H, W), dtype=jnp.float32)
    b = jax.random.normal(kb, (B, C, H, W), dtype=jnp.float32)

    # no-mask case: Pallas (bf16 MXU, f32 softmax) vs pure-JAX reference of the same math
    y, _ = contextual_attention(f, b, None, ksize=3, stride=1, rate=2, softmax_scale=10.0)
    y = jax.block_until_ready(y)
    y_ref, _ = contextual_attention(f, b, None, ksize=3, stride=1, rate=2,
                                    softmax_scale=10.0, use_pallas=False)
    y_ref = jax.block_until_ready(y_ref)
    assert y.shape == (B, C, H, W)
    assert bool(jnp.all(jnp.isfinite(y)))
    assert bool(jnp.allclose(y, y_ref, atol=2e-2, rtol=2e-2))

    # masked case (mask given at resolution H * 2**n_down, as the torch module expects)
    mask = jnp.zeros((B, 1, 64, 64), jnp.float32).at[:, :, :32, :32].set(1.0)
    ym, _ = contextual_attention(f, b, mask, ksize=3, stride=1, rate=2, softmax_scale=10.0)
    ym_ref, _ = contextual_attention(f, b, mask, ksize=3, stride=1, rate=2,
                                     softmax_scale=10.0, use_pallas=False)
    jax.block_until_ready((ym, ym_ref))
    assert bool(jnp.all(jnp.isfinite(ym)))
    assert bool(jnp.allclose(ym, ym_ref, atol=2e-2, rtol=2e-2))

    print("KERNEL_OK")
</pallas_src>

<mosaic_0001>
module attributes {stable_mosaic.version = 11 : i64} {
  func.func @_ca_kernel(%arg0: i32, %arg1: i32, %arg2: memref<1x64x128xf32, #tpu.memory_space<vmem>>, %arg3: memref<1x128x64xf32, #tpu.memory_space<vmem>>, %arg4: memref<1x64x128xf32, #tpu.memory_space<vmem>>, %arg5: memref<1x64x128xf32, #tpu.memory_space<vmem>>) attributes {dimension_semantics = [#tpu.dimension_semantics<parallel>, #tpu.dimension_semantics<parallel>], iteration_bounds = array<i64: 2, 1>, scalar_prefetch = 0 : i64, scratch_operands = 0 : i64, tpu.core_type = #tpu.core_type<tc>, window_params = [{transform_indices = @transform_0, window_bounds = array<i64: 1, 64, 128>}, {transform_indices = @transform_1, window_bounds = array<i64: 1, 128, 64>}, {transform_indices = @transform_2, window_bounds = array<i64: 1, 64, 128>}, {transform_indices = @transform_3, window_bounds = array<i64: 1, 64, 128>}]} {
    %c0 = arith.constant 0 : index
    %c0_0 = arith.constant 0 : index
    %c0_1 = arith.constant 0 : index
    %0 = vector.load %arg2[%c0, %c0_0, %c0_1] : memref<1x64x128xf32, #tpu.memory_space<vmem>>, vector<1x64x128xf32>
    %1 = vector.shape_cast %0 : vector<1x64x128xf32> to vector<64x128xf32>
    %2 = arith.truncf %1 : vector<64x128xf32> to vector<64x128xbf16>
    %c0_2 = arith.constant 0 : index
    %c0_3 = arith.constant 0 : index
    %c0_4 = arith.constant 0 : index
    %3 = vector.load %arg3[%c0_2, %c0_3, %c0_4] : memref<1x128x64xf32, #tpu.memory_space<vmem>>, vector<1x128x64xf32>
    %4 = vector.shape_cast %3 : vector<1x128x64xf32> to vector<128x64xf32>
    %5 = arith.truncf %4 : vector<128x64xf32> to vector<128x64xbf16>
    %cst = arith.constant dense<0.000000e+00> : vector<64x64xf32>
    %6 = tpu.matmul %2, %5, %cst {dimension_numbers = #tpu.dot_dimension_numbers<[1], [0], [0], [1], [0, 0, 1, 1], [], []>} : vector<64x128xbf16>, vector<128x64xbf16>, vector<64x64xf32> -> vector<64x64xf32>
    %cst_5 = arith.constant dense<0xFF800000> : vector<64xf32>
    %7 = vector.multi_reduction <maximumf>, %6, %cst_5 [1] : vector<64x64xf32> to vector<64xf32>
    %8 = vector.shape_cast %7 : vector<64xf32> to vector<64x1xf32>
    %9 = vector.broadcast %8 : vector<64x1xf32> to vector<64x64xf32>
    %10 = arith.subf %6, %9 : vector<64x64xf32>
    %11 = math.exp %10 : vector<64x64xf32>
    %cst_6 = arith.constant dense<0.000000e+00> : vector<64xf32>
    %12 = vector.multi_reduction <add>, %11, %cst_6 [1] : vector<64x64xf32> to vector<64xf32>
    %13 = vector.shape_cast %12 : vector<64xf32> to vector<64x1xf32>
    %14 = arith.truncf %11 : vector<64x64xf32> to vector<64x64xbf16>
    %c0_7 = arith.constant 0 : index
    %c0_8 = arith.constant 0 : index
    %c0_9 = arith.constant 0 : index
    %15 = vector.load %arg4[%c0_7, %c0_8, %c0_9] : memref<1x64x128xf32, #tpu.memory_space<vmem>>, vector<1x64x128xf32>
    %16 = vector.shape_cast %15 : vector<1x64x128xf32> to vector<64x128xf32>
    %17 = arith.truncf %16 : vector<64x128xf32> to vector<64x128xbf16>
    %cst_10 = arith.constant dense<0.000000e+00> : vector<64x128xf32>
    %18 = tpu.matmul %14, %17, %cst_10 {dimension_numbers = #tpu.dot_dimension_numbers<[1], [0], [0], [1], [0, 0, 1, 1], [], []>} : vector<64x64xbf16>, vector<64x128xbf16>, vector<64x128xf32> -> vector<64x128xf32>
    %19 = tpu.reciprocal %13 {approx = true} : vector<64x1xf32> -> vector<64x1xf32>
    %20 = vector.broadcast %19 : vector<64x1xf32> to vector<64x128xf32>
    %21 = arith.mulf %18, %20 : vector<64x128xf32>
    %c0_11 = arith.constant 0 : index
    %c0_12 = arith.constant 0 : index
    %c0_13 = arith.constant 0 : index
    %22 = vector.load %arg5[%c0_11, %c0_12, %c0_13] : memref<1x64x128xf32, #tpu.memory_space<vmem>>, vector<1x64x128xf32>
    %23 = vector.shape_cast %22 : vector<1x64x128xf32> to vector<64x128xf32>
    %24 = vector.shape_cast %21 : vector<64x128xf32> to vector<1x64x128xf32>
    tpu.vector_store %arg5[%c0_11, %c0_12, %c0_13], %24 {strides = array<i32>} : memref<1x64x128xf32, #tpu.memory_space<vmem>>, vector<1x64x128xf32>,
    return
  }
  func.func @transform_0(%arg0: i32, %arg1: i32) -> (i32, i32, i32) {
    %c0_i32 = arith.constant 0 : i32
    %c0_i32_0 = arith.constant 0 : i32
    return %arg0, %arg1, %c0_i32 : i32, i32, i32
  }
  func.func @transform_1(%arg0: i32, %arg1: i32) -> (i32, i32, i32) {
    %c0_i32 = arith.constant 0 : i32
    %c0_i32_0 = arith.constant 0 : i32
    %c0_i32_1 = arith.constant 0 : i32
    return %arg0, %c0_i32, %c0_i32_0 : i32, i32, i32
  }
  func.func @transform_2(%arg0: i32, %arg1: i32) -> (i32, i32, i32) {
    %c0_i32 = arith.constant 0 : i32
    %c0_i32_0 = arith.constant 0 : i32
    %c0_i32_1 = arith.constant 0 : i32
    return %arg0, %c0_i32, %c0_i32_0 : i32, i32, i32
  }
  func.func @transform_3(%arg0: i32, %arg1: i32) -> (i32, i32, i32) {
    %c0_i32 = arith.constant 0 : i32
    %c0_i32_0 = arith.constant 0 : i32
    return %arg0, %arg1, %c0_i32 : i32, i32, i32
  }
}

</mosaic_0001>

<bundles_post_ra>
// kernel: tpu_custom_call.1
= control target key start
LH: loop header
LB: loop body
LE: loop exit
PB: predicated region body
PF: predicated region fallthrough
CT: control target
= control target key end

     0   :  { %8 = vsyncpa [#allocation3], 0  ;;  %s1121_s0 = inlined_call_operand.vmem [shape: f32[2,64,128], index: 0, kind: input, shape index: {}]   ;;  %s1122_s1 = inlined_call_operand.vmem [shape: f32[2,128,64], index: 1, kind: input, shape index: {}]   ;;  %s1123_s2 = inlined_call_operand.vmem [shape: f32[2,64,128], index: 2, kind: input, shape index: {}]   ;;  %s1124_s3 = inlined_call_operand.hbm [shape: f32[2,64,128], index: 3, kind: output, shape index: {}]  }
   0x1   :  { %10 = vsyncpa [#allocation3 + $0x1], 0  ;;  %s926_s12 = smov 0   ;;  %s928_s13 = smov 0  }
   0x2   :  { %s930_s14 = smov 0   ;;  %s932_s15 = smov 0  }
   0x3   :  { %s934_s16 = smov 0   ;;  %s936_s17 = smov 0  }
   0x4 LB: > { %s651_s18 = sadd.s32 4294967295, %s901_s17   ;;  %s652_s19 = sadd.s32 4294967294, %s901_s17   ;;  %s901_s17 = sphi %s936_s17, %s16_s17   ;;  %s897_s16 = sphi %s934_s16, %s1131_s16   ;;  %s893_s15 = sphi %s932_s15, %s1130_s15   ;;  %s889_s14 = sphi %s930_s14, %s1129_s14   ;;  %s885_s13 = sphi %s928_s13, %s1128_s13   ;;  %s881_s12 = sphi %s926_s12, %s1127_s12  }
   0x5   : > { %s28_s20 = sadd.s32 1, %s897_s16  ;;  %s117_s21 = sadd.s32 1, %s889_s14 }
   0x6   : > { %p30_p0 = scmp.ge.s32.totalorder %s28_s20, 2  ;;  %p127_p1 = scmp.ne.s32.totalorder %s889_s14, %s885_s13 }
   0x7   : > { %p128_p2 = scmp.eq.s32.totalorder %s651_s18, 1  ;;  %p133_p3 = scmp.ne.s32.totalorder %s885_s13, %s881_s12 }
   0x8   : > { %s1133_s20 = smov (%p30_p0, %s28_s20), 0  ;;  %p134_p5 = scmp.eq.s32.totalorder %s652_s19, 1 }
   0x9   : > { %p966_p4 = por %p128_p2, %p127_p1  ;;  %s112_s23 = ssub.s32 %s897_s16, %s1133_s20 }
   0xa   : > { %p655_p6 = scmp.ge.s32.totalorder %s901_s17, 1  ;;  %p115_p7 = scmp.eq.s32.totalorder %s112_s23, 0 }
   0xb   : > { %p973_p8 = por %p134_p5, %p133_p3  ;;  %p181_p9 = scmp.lt.s32.totalorder %s901_s17, 3 }
   0xc   : > { %s979_s25 = scalar_select %p115_p7, %s889_s14, %s117_s21  }
   0xd   : > { %p182_p10 = pnand %p655_p6, %p181_p9 }
   0xe   : > { %p220_p11 = scmp.lt.s32.totalorder (!%p182_p10), %s893_s15, 1  ;;  %s216_s11 = sand.u32 (!%p182_p10), 1, %s885_s13  }
   0xf   : > { %185 = sbr.rel (%p182_p10) target bundleno = 644 (0x284), region = 32  ;;  %s656_s18 = sshll.u32 (!%p182_p10), %s216_s11, 6 }
  0x10   : > { %s1055_s19 = scalar_lea.vmem (!%p182_p10), [#allocation2], %s656_s18  ;;  %s675_s21 = sshll.u32 (!%p182_p10), %s893_s15, 10 }
  0x11   : > { %s548_s23 = sshll.u32 (!%p182_p10), %s1055_s19, 4  ;;  %s1068_s28 = scalar_lea.hbm (!%p182_p10), %s1124_s3, %s675_s21  ;;  %s1070_s23 = int_to_ptr.vmem [resolvable:$true] %s548_s23 }
  0x12   : > { %s825_s29 = scalar_lea.vmem (!%p182_p10), %s1070_s23, 1024 }
  0x13   : > { %p826_p12 = scmp.ne.s32.totalorder (!%p182_p10), %s1070_s23, %s825_s29 }
  0x14   : > { %s983_s26 = scalar_select %p220_p11, %s893_s15, 1  ;;  %vm342_vm0 = vcmask 523264  }
  0x15   : > { %s1076_s15 = scalar_lea.sflag [#allocation3], %s216_s11  ;;  %p827_p13 = pnand %p826_p12, %p966_p4 }
  0x16   : > { %s673_s27 = sshll.u32 %s983_s26, 7  ;;  %s672_s4 = sshll.u32 %s983_s26, 6 }
  0x17   : > { %s989_s30 = scalar_lea.vmem %s1122_s1, %s673_s27  ;;  %s1003_s7 = scalar_lea.vmem %s1121_s0, %s672_s4 }
  0x18   : > { %v267_v0 = vld [vmem:[%s989_s30 + $0x70] sm:$0xff]  ;;  %v268_v1 = vld [vmem:[%s989_s30 + $0x78] sm:$0xff]  ;;  %v265_v2 = vld [vmem:[%s989_s30 + $0x60] sm:$0xff]  ;;  %s238_s10 = scalar_lea.vmem %s1123_s2, %s672_s4  ;;  %p828_p0 = pneg %p827_p13 }
  0x19   : > { %v276_v3 = vpack.c.bf16 %v268_v1, %v267_v0  ;;  %v266_v4 = vld [vmem:[%s989_s30 + $0x68] sm:$0xff]  ;;  %v263_v6 = vld [vmem:[%s989_s30 + $0x50] sm:$0xff]  ;;  %v264_v7 = vld [vmem:[%s989_s30 + $0x58] sm:$0xff] }
  0x1a   : > { %v275_v5 = vpack.c.bf16 %v266_v4, %v265_v2  ;;  %v274_v8 = vpack.c.bf16 %v264_v7, %v263_v6  ;;  %v241_v9 = vld [vmem:[%s1003_s7] sm:$0xff]  ;;  %v242_v10 = vld [vmem:[%s1003_s7 + $0x8] sm:$0xff]  ;;  %v259_v15 = vld [vmem:[%s989_s30 + $0x30] sm:$0xff] }
  0x1b   : > { %696 = vmatprep.subr.bf16.mxu0 %v276_v3  ;;  %v261_v11 = vld [vmem:[%s989_s30 + $0x40] sm:$0xff]  ;;  %v262_v12 = vld [vmem:[%s989_s30 + $0x48] sm:$0xff]  ;;  %v249_v13 = vpack.c.bf16 %v242_v10, %v241_v9  ;;  %v260_v16 = vld [vmem:[%s989_s30 + $0x38] sm:$0xff] }
  0x1c   : > { %697 = vmatpush3.bf16.msra.mxu0 %v276_v3  ;;  %v273_v14 = vpack.c.bf16 %v262_v12, %v261_v11  ;;  %v272_v17 = vpack.c.bf16 %v260_v16, %v259_v15  ;;  %v257_v18 = vld [vmem:[%s989_s30 + $0x20] sm:$0xff]  ;;  %v258_v19 = vld [vmem:[%s989_s30 + $0x28] sm:$0xff]  ;;  %v255_v21 = vld [vmem:[%s989_s30 + $0x10] sm:$0xff] }
  0x1d   : > { %698 = vmatprep.subr.bf16.mxu0 %v275_v5  ;;  %712 = vmatprep.mubr.bf16.mxu0 %v249_v13  ;;  %v271_v20 = vpack.c.bf16 %v258_v19, %v257_v18  ;;  %v256_v22 = vld [vmem:[%s989_s30 + $0x18] sm:$0xff]  ;;  %v253_v24 = vld [vmem:[%s989_s30] sm:$0xff]  ;;  %v254_v25 = vld [vmem:[%s989_s30 + $0x8] sm:$0xff]  ;;  %s903_s30 = smov [#allocation2]  }
  0x1e   : > { %v270_v23 = vpack.c.bf16 %v256_v22, %v255_v21  ;;  %v269_v26 = vpack.c.bf16 %v254_v25, %v253_v24  ;;  %v243_v27 = vld [vmem:[%s1003_s7 + $0x10] sm:$0xff]  ;;  %v244_v28 = vld [vmem:[%s1003_s7 + $0x18] sm:$0xff]  ;;  %v245_v29 = vld [vmem:[%s1003_s7 + $0x20] sm:$0xff]  ;;  %s829_s4 = sshll.u32 %s903_s30, 4  ;;  %s830_s4 = int_to_ptr.vmem [resolvable:$false] %s829_s4 }
  0x1f   : > { %v246_v30 = vld [vmem:[%s1003_s7 + $0x28] sm:$0xff]  ;;  %v250_v31 = vpack.c.bf16 %v244_v28, %v243_v27  ;;  %v247_v33 = vld [vmem:[%s1003_s7 + $0x30] sm:$0xff]  ;;  %v248_v34 = vld [vmem:[%s1003_s7 + $0x38] sm:$0xff]  ;;  %s831_s5 = scalar_lea.vmem %s830_s4, 2048  ;;  %p832_p1 = scmp.lt.s32.totalorder %s1070_s23, %s830_s4 }
  0x20   : > { %699 = vmatpush3.bf16.msra.mxu0 %v275_v5  ;;  %v251_v32 = vpack.c.bf16 %v246_v30, %v245_v29  ;;  %v252_v35 = vpack.c.bf16 %v248_v34, %v247_v33  ;;  %v425_v52 = vld [vmem:[%s238_s10 + $0x30] sm:$0xff]  ;;  %v426_v53 = vld [vmem:[%s238_s10 + $0x38] sm:$0xff]  ;;  %v423_v55 = vld [vmem:[%s238_s10 + $0x20] sm:$0xff]  ;;  %p833_p2 = scmp.lt.s32.totalorder %s831_s5, %s825_s29 }
  0x21   : > { %700 = vmatprep.subr.bf16.mxu0 %v274_v8  ;;  %v430_v54 = vpack.c.bf16 %v426_v53, %v425_v52  ;;  %v424_v56 = vld [vmem:[%s238_s10 + $0x28] sm:$0xff]  ;;  %v421_v58 = vld [vmem:[%s238_s10 + $0x10] sm:$0xff]  ;;  %v422_v59 = vld [vmem:[%s238_s10 + $0x18] sm:$0xff] }
  0x22   : > { %v429_v57 = vpack.c.bf16 %v424_v56, %v423_v55  ;;  %v428_v60 = vpack.c.bf16 %v422_v59, %v421_v58  ;;  %v419_v61 = vld [vmem:[%s238_s10] sm:$0xff]  ;;  %v420_v62 = vld [vmem:[%s238_s10 + $0x8] sm:$0xff]  ;;  %p834_p3 = por %p833_p2, %p832_p1 }
  0x23   : > { %720 = vmatprep.subr.bf16.mxu1 %v430_v54  ;;  %v427_v63 = vpack.c.bf16 %v420_v62, %v419_v61 }
  0x24   : > { %701 = vmatpush3.bf16.msra.mxu0 %v274_v8  ;;  %721 = vmatpush3.bf16.msra.mxu1 %v430_v54  ;;  %p835_p5 = pnand %p834_p3, %p828_p0 }
  0x25   : > { %702 = vmatprep.subr.bf16.mxu0 %v273_v14  ;;  %722 = vmatprep.subr.bf16.mxu1 %v429_v57 }
  0x28   : > { %703 = vmatpush3.bf16.msra.mxu0 %v273_v14  ;;  %723 = vmatpush3.bf16.msra.mxu1 %v429_v57 }
  0x29   : > { %704 = vmatprep.subr.bf16.mxu0 %v272_v17  ;;  %724 = vmatprep.subr.bf16.mxu1 %v428_v60 }
  0x2c   : > { %705 = vmatpush3.bf16.msra.mxu0 %v272_v17  ;;  %725 = vmatpush3.bf16.msra.mxu1 %v428_v60 }
  0x2d   : > { %706 = vmatprep.subr.bf16.mxu0 %v271_v20  ;;  %726 = vmatprep.subr.bf16.mxu1 %v427_v63 }
  0x30   : > { %707 = vmatpush3.bf16.msra.mxu0 %v271_v20  ;;  %727 = vmatpush3.bf16.msra.mxu1 %v427_v63 }
  0x31   : > { %708 = vmatprep.subr.bf16.mxu0 %v270_v23 }
  0x34   : > { %709 = vmatpush3.bf16.msra.mxu0 %v270_v23 }
  0x35   : > { %710 = vmatprep.subr.bf16.mxu0 %v269_v26 }
  0x38   : > { %711 = vmatpush3.bf16.msra.mxu0 %v269_v26 }
  0x3b   : > { %713 = vmatmul.mubr.bf16.vlgmr.msra.gmra.mxu0 %v250_v31 }
  0x3c   : > { %716 = vmatprep.mubr.bf16.mxu0 %v251_v32 }
  0x43   : > { %717 = vmatmul.mubr.bf16.gmra.mxu0 %v252_v35 }
  0xfb   : > { %v714_v36 = vpop.f32.mrf.mxu0 }
  0xfc   : > { %v349_v37 = vsel %vm342_vm0, %v714_v36, -inf }
  0xfd   : > { %350 = vmax.xlane.f32.xlu1 %v349_v37  ;;  %v311_v38 = vpop.f32.mrf.mxu0 }
  0xfe   : > { %v343_v39 = vsel %vm342_vm0, %v311_v38, -inf }
  0xff   : > { %344 = vmax.xlane.f32.xlu0 %v343_v39  ;;  %v715_v40 = vpop.f32.mrf.mxu0 }
 0x100   : > { %v352_v41 = vsel %vm342_vm0, %v715_v40, -inf }
 0x101   : > { %353 = vmax.xlane.f32.xlu1 %v352_v41  ;;  %v314_v42 = vpop.f32.mrf.mxu0 }
 0x102   : > { %v346_v43 = vsel %vm342_vm0, %v314_v42, -inf }
 0x103   : > { %347 = vmax.xlane.f32.xlu0 %v346_v43  ;;  %v718_v44 = vpop.f32.mrf.mxu0 }
 0x104   : > { %v361_v49 = vsel %vm342_vm0, %v718_v44, -inf }
 0x105   : > { %v327_v45 = vpop.f32.mrf.mxu0 }
 0x106   : > { %v355_v46 = vsel %vm342_vm0, %v327_v45, -inf }
 0x107   : > { %356 = vmax.xlane.f32.xlu0 %v355_v46  ;;  %v1028_v47 = vpop.f32.mrf.mxu0 }
 0x108   : > { %v364_v51 = vsel %vm342_vm0, %v1028_v47, -inf }
 0x109   : > { %v330_v48 = vpop.f32.mrf.mxu0 }
 0x10a   : > { %v358_v50 = vsel %vm342_vm0, %v330_v48, -inf }
 0x10b   : > { %362 = vmax.xlane.f32.xlu0 %v361_v49  ;;  %359 = vmax.xlane.f32.xlu1 %v358_v50 }
 0x10f   : > { %365 = vmax.xlane.f32.xlu1 %v364_v51 }
 0x186   : > { %v351_v0 = vpop.xlane.xlu1 %350 }
 0x187   : > { %v369_v1 = vsub.f32 %v714_v36, %v351_v0 }
 0x188   : > { %v345_v2 = vpop.xlane.xlu0 %344 }
 0x189   : > { %v379_v3 = vmul.f32 1.442695, %v369_v1  ;;  %v367_v4 = vsub.f32 %v311_v38, %v345_v2 }
 0x18a   : > { %v354_v5 = vpop.xlane.xlu1 %353 }
 0x18b   : > { %793 = vpow2.f32 %v379_v3  ;;  %v375_v6 = vmul.f32 1.442695, %v367_v4  ;;  %v370_v7 = vsub.f32 %v715_v40, %v354_v5 }
 0x18c   : > { %v348_v8 = vpop.xlane.xlu0 %347 }
 0x18d   : > { %795 = vpow2.f32 %v375_v6  ;;  %v381_v9 = vmul.f32 1.442695, %v370_v7  ;;  %v368_v10 = vsub.f32 %v314_v42, %v348_v8 }
 0x18f   : > { %797 = vpow2.f32 %v381_v9  ;;  %v377_v11 = vmul.f32 1.442695, %v368_v10 }
 0x190   : > { %v357_v12 = vpop.xlane.xlu0 %356 }
 0x191   : > { %799 = vpow2.f32 %v377_v11  ;;  %v371_v13 = vsub.f32 %v327_v45, %v357_v12 }
 0x193   : > { %v383_v14 = vmul.f32 1.442695, %v371_v13 }
 0x194   : > { %v363_v15 = vpop.xlane.xlu0 %362  ;;  %v360_v16 = vpop.xlane.xlu1 %359 }
 0x195   : > { %801 = vpow2.f32 %v383_v14  ;;  %v373_v17 = vsub.f32 %v718_v44, %v363_v15  ;;  %v372_v18 = vsub.f32 %v330_v48, %v360_v16 }
 0x197   : > { %v387_v19 = vmul.f32 1.442695, %v373_v17  ;;  %v385_v20 = vmul.f32 1.442695, %v372_v18 }
 0x198   : > { %v794_v21 = vpop.eup %793  ;;  %v366_v22 = vpop.xlane.xlu1 %365 }
 0x199   : > { %803 = vpow2.f32 %v387_v19  ;;  %v374_v23 = vsub.f32 %v1028_v47, %v366_v22  ;;  %v397_v24 = vsel %vm342_vm0, %v794_v21, 0.0 }
 0x19a   : > { %v796_v25 = vpop.eup %795  ;;  %805 = vpow2.f32 %v385_v20  ;;  %398 = vadd.xlane.f32.xlu0 %v397_v24 }
 0x19b   : > { %v389_v26 = vmul.f32 1.442695, %v374_v23  ;;  %v391_v28 = vsel %vm342_vm0, %v796_v25, 0.0 }
 0x19c   : > { %v798_v27 = vpop.eup %797 }
 0x19d   : > { %807 = vpow2.f32 %v389_v26  ;;  %v400_v29 = vsel %vm342_vm0, %v798_v27, 0.0  ;;  %v416_v32 = vpack.c.bf16 %v798_v27, %v794_v21 }
 0x19e   : > { %v800_v30 = vpop.eup %799  ;;  %392 = vadd.xlane.f32.xlu0 %v391_v28  ;;  %401 = vadd.xlane.f32.xlu1 %v400_v29 }
 0x19f   : > { %v415_v31 = vpack.c.bf16 %v800_v30, %v796_v25  ;;  %v394_v33 = vsel %vm342_vm0, %v800_v30, 0.0 }
 0x1a1   : > { %728 = vmatprep.mubr.msk.bf16.mxu1 %vm342_vm0, %v415_v31 }
 0x1a2   : > { %v802_v34 = vpop.eup %801  ;;  %729 = vmatmul.mubr.msk.bf16.vlgmr.msra.gmra.mxu1 %vm342_vm0, %v416_v32  ;;  %395 = vadd.xlane.f32.xlu1 %v394_v33 }
 0x1a3   : > { %v403_v35 = vsel %vm342_vm0, %v802_v34, 0.0 }
 0x1a4   : > { %404 = vadd.xlane.f32.xlu0 %v403_v35 }
 0x1a6   : > { %v804_v36 = vpop.eup %803 }
 0x1a7   : > { %v806_v37 = vpop.eup %805  ;;  %v409_v38 = vsel %vm342_vm0, %v804_v36, 0.0 }
 0x1a8   : > { %410 = vadd.xlane.f32.xlu0 %v409_v38  ;;  %v406_v39 = vsel %vm342_vm0, %v806_v37, 0.0  ;;  %v417_v40 = vpack.c.bf16 %v806_v37, %v802_v34 }
 0x1a9   : > { %407 = vadd.xlane.f32.xlu1 %v406_v39 }
 0x1aa   : > { %v808_v41 = vpop.eup %807  ;;  %732 = vmatprep.mubr.msk.bf16.mxu1 %vm342_vm0, %v417_v40 }
 0x1ab   : > { %v412_v42 = vsel %vm342_vm0, %v808_v41, 0.0  ;;  %v418_v43 = vpack.c.bf16 %v808_v41, %v804_v36 }
 0x1ad   : > { %413 = vadd.xlane.f32.xlu1 %v412_v42  ;;  %733 = vmatmul.mubr.msk.bf16.gmra.mxu1 %vm342_vm0, %v418_v43 }
 0x223   : > { %v399_v44 = vpop.xlane.xlu0 %398 }
 0x224   : > { %809 = vrcp.f32 %v399_v44 }
 0x227   : > { %v402_v45 = vpop.xlane.xlu1 %401  ;;  %v393_v46 = vpop.xlane.xlu0 %392 }
 0x228   : > { %811 = vrcp.f32 %v393_v46 }
 0x229   : > { %813 = vrcp.f32 %v402_v45 }
 0x22b   : > { %v396_v47 = vpop.xlane.xlu1 %395 }
 0x22c   : > { %815 = vrcp.f32 %v396_v47 }
 0x22d   : > { %v405_v48 = vpop.xlane.xlu0 %404 }
 0x231   : > { %v411_v50 = vpop.xlane.xlu0 %410  ;;  %v810_v52 = vpop.eup %809 }
 0x232   : > { %v408_v49 = vpop.xlane.xlu1 %407  ;;  %817 = vrcp.f32 %v411_v50 }
 0x233   : > { %819 = vrcp.f32 %v405_v48 }
 0x235   : > { %v812_v55 = vpop.eup %811 }
 0x236   : > { %v414_v51 = vpop.xlane.xlu1 %413  ;;  %v814_v58 = vpop.eup %813 }
 0x237   : > { %821 = vrcp.f32 %v414_v51 }
 0x238   : > { %823 = vrcp.f32 %v408_v49 }
 0x239   : > { %v816_v61 = vpop.eup %815 }
 0x23f   : > { %v818_v0 = vpop.eup %817 }
 0x240   : > { %v820_v3 = vpop.eup %819 }
 0x244   : > { %v822_v6 = vpop.eup %821 }
 0x245   : > { %v824_v9 = vpop.eup %823 }
 0x262   : > { %v730_v53 = vpop.f32.mrf.mxu1 }
 0x263   : > { %v518_v54 = vmul.f32 %v810_v52, %v730_v53 }
 0x264   : > { %v477_v56 = vpop.f32.mrf.mxu1 }
 0x265   : > { %526 = vst [vmem:[%s1055_s19 + $0x10] sm:$0xff] %v518_v54  ;;  %v516_v57 = vmul.f32 %v812_v55, %v477_v56 }
 0x266   : > { %v731_v59 = vpop.f32.mrf.mxu1 }
 0x267   : > { %524 = vst [vmem:[%s1055_s19] sm:$0xff] %v516_v57  ;;  %v519_v60 = vmul.f32 %v814_v58, %v731_v59 }
 0x268   : > { %v480_v62 = vpop.f32.mrf.mxu1 }
 0x269   : > { %527 = vst [vmem:[%s1055_s19 + $0x18] sm:$0xff] %v519_v60  ;;  %v517_v63 = vmul.f32 %v816_v61, %v480_v62 }
 0x26b   : > { %525 = vst [vmem:[%s1055_s19 + $0x8] sm:$0xff] %v517_v63 }
 0x26d   : > { %v734_v1 = vpop.f32.mrf.mxu1 }
 0x26e   : > { %v522_v2 = vmul.f32 %v818_v0, %v734_v1 }
 0x26f   : > { %v493_v4 = vpop.f32.mrf.mxu1 }
 0x270   : > { %530 = vst [vmem:[%s1055_s19 + $0x30] sm:$0xff] %v522_v2  ;;  %v520_v5 = vmul.f32 %v820_v3, %v493_v4 }
 0x271   : > { %v735_v7 = vpop.f32.mrf.mxu1 }
 0x272   : > { %528 = vst [vmem:[%s1055_s19 + $0x20] sm:$0xff] %v520_v5  ;;  %v523_v8 = vmul.f32 %v822_v6, %v735_v7 }
 0x273   : > { %v496_v10 = vpop.f32.mrf.mxu1 }
 0x274   : > { %531 = vst [vmem:[%s1055_s19 + $0x38] sm:$0xff] %v523_v8  ;;  %v521_v11 = vmul.f32 %v824_v9, %v496_v10 }
 0x276   : > { %529 = vst [vmem:[%s1055_s19 + $0x28] sm:$0xff] %v521_v11 }
 0x277   : > { %838 = shalt.err (!%p835_p5)
}
 0x278   : > { %s839_s6 = scalar_lea.hbm %s1068_s28, 1024  ;;  %s843_s9 = scalar_lea.hbm %s1124_s3, 2048 }
 0x279   : > { %p840_p6 = scmp.ne.s32.totalorder %s1068_s28, %s839_s6  ;;  %p844_p10 = scmp.lt.s32.totalorder %s1068_s28, %s1124_s3 }
 0x27a   : > { %p845_p11 = scmp.lt.s32.totalorder %s843_s9, %s839_s6 }
 0x27b   : > { %p841_p7 = pnand %p840_p6, %p966_p4 }
 0x27c   : > { %p846_p12 = por %p845_p11, %p844_p10 }
 0x27d   : > { %p842_p9 = pneg %p841_p7 }
 0x27f   : > { %p847_p13 = pnand %p846_p12, %p842_p9 }
 0x281   : > { %850 = shalt.err (!%p847_p13)
}
 0x282   : > { %s904_s18 = smov 128   ;;  %s905_s19 = smov 8  }
 0x283   : > { %736 = dma.vmem_to_hbm [thread:$0]  (%p966_p4), %s1070_s23, 1024, %s1068_s28, %s1076_s15, %s904_s18, %s904_s18, %s905_s19  }
 0x284 PF: > { %p742_p0 = scmp.ge.s32.totalorder %s901_s17, 2  ;;  %s563_s21 = sand.u32 1, %s881_s12  }
 0x285   : > { %s564_s26 = scalar_lea.sflag [#allocation3], %s563_s21 }
 0x286   : > { %p739_p1 = pnand %p742_p0, %p973_p8 }
 0x288   : > { %p740_p2 = pneg %p739_p1 }
 0x28a   : > { %876 = dma.done.wait (%p740_p2), %s564_s26, 1024  }
 0x28b   : > { %878 = vsyncadd (%p740_p2), %s564_s26, 4294966272  ;;  %s16_s17 = sadd.s32 1, %s901_s17   ;;  %s1127_s12 = smov %s885_s13 }
 0x28c   : > { %p13_p3 = scmp.ge.s32.totalorder %s16_s17, 4   ;;  %s1128_s13 = smov %s889_s14 }
 0x28d   : > { %s1129_s14 = smov %s979_s25  ;;  %s1130_s15 = smov %s897_s16 }
 0x28e   : > { %s1131_s16 = smov %s1133_s20  ;;  %15 = sbr.rel (!%p13_p3) target bundleno = 4 (0x4), region = 73 }
 0x293   :  { %569 = vsyncpa [#allocation3], 1 }
 0x294   :  { %571 = vsyncpa [#allocation3 + $0x1], 1 }

</bundles_post_ra>
